<compile_context>
chip_gen: v6e
topology: v6e:2x2x1
jax: 0.10.0
libtpu: 0.0.40
codegen_flags: <defaults>
</compile_context>

<pallas_src>
import jax
import jax.numpy as jnp
import numpy as np
from jax.experimental import pallas as pl
from jax.experimental.pallas import tpu as pltpu

# ---------------------------------------------------------------------------
# Config (mirrors the fields DSSMTwo.__init__ reads from `config`)
# ---------------------------------------------------------------------------
VOCAB_SIZE = 50
HIDDEN_SIZE = 32                      # embedding dim == Conv1d in_channels
KERNEL_OUT = 16                       # Conv1d out_channels
KERNEL_SIZE = 3
MAX_LEN = 16                          # conv output width == query_sem in_features
KMAX = 1                              # non-'bce' learn_gamma requires kmax == 1
LATENT_OUT = 8
SEQ_LEN = MAX_LEN + KERNEL_SIZE - 1   # so 'valid' conv output width == MAX_LEN
BATCH = 2
LOSS = "mse"                          # non-'bce' => learn_gamma = Linear(2*latent, 2)

# ---------------------------------------------------------------------------
# Derived packing / layout constants
# ---------------------------------------------------------------------------
KH = KERNEL_SIZE * HIDDEN_SIZE        # 96   im2col rows per branch
CONV_K = 2 * KH + 1                   # 193  conv contraction: [q rows | d rows | ones]
C2 = 2 * KERNEL_OUT                   # 32   conv output rows: [q channels | d channels]
L2 = 2 * MAX_LEN                      # 32   sem contraction:  [q pooled | d pooled]
LAT2 = 2 * LATENT_OUT                 # 16   sem output:       [q_s | d_s]

# Row map of the single packed weight slab (all section starts 8-row aligned).
W_CONV_ROW = 0                                        # (2C, 2*K*H+1) block-diag conv (+ bias col)
W_SEM_ROW = C2                                        # (2*Lout, 2*latent) block-diag sem
B_SEM_ROW = W_SEM_ROW + L2                            # (1, 2*latent)   [bqs | bds]
W_G_ROW = ((B_SEM_ROW + 1 + 7) // 8) * 8              # (2*latent, 2)   learn_gamma weight^T
B_G_ROW = W_G_ROW + LAT2                              # (1, 2)          learn_gamma bias
WPACK_ROWS = ((B_G_ROW + 1 + 7) // 8) * 8
WPACK_COLS = CONV_K


# ---------------------------------------------------------------------------
# Pallas kernel: single invocation, whole batch + both branches fused
# ---------------------------------------------------------------------------
def dssm_kernel(x_ref, w_ref, out_ref):
    """Ref layouts (all f32):
      x_ref   : (2*K*H + 1, B*Lout)   im2col'd query rows | doc rows | ones row
      w_ref   : (WPACK_ROWS, CONV_K)  packed weight slab (see row map above)
      out_ref : (B, 2)
    """
    B = out_ref.shape[0]
    L = MAX_LEN

    # 1) Both conv branches + biases as ONE block-diagonal MXU matmul, then relu.
    conv = jnp.maximum(
        jnp.dot(w_ref[W_CONV_ROW:W_CONV_ROW + C2, :], x_ref[...],
                preferred_element_type=jnp.float32),
        0.0)                                                    # (2C, B*Lout)

    # 2) kmax pooling over channels (kmax == 1 -> per-position channel max).
    # TODO(synk): general kmax > 1 pooling (the module's non-'bce' learn_gamma
    # head is only shape-consistent for kmax == 1).
    pq = jnp.max(conv[:KERNEL_OUT, :], axis=0, keepdims=True)   # (1, B*Lout)
    pd = jnp.max(conv[KERNEL_OUT:, :], axis=0, keepdims=True)   # (1, B*Lout)
    # Re-tile columns (b, t) into rows = batch; cheap slicing/concat, no dots.
    pqs = jnp.concatenate([pq[:, b * L:(b + 1) * L] for b in range(B)], axis=0)  # (B, Lout)
    pds = jnp.concatenate([pd[:, b * L:(b + 1) * L] for b in range(B)], axis=0)  # (B, Lout)
    pooled = jnp.concatenate([pqs, pds], axis=1)                                  # (B, 2*Lout)

    # 3) Both sem layers as ONE block-diagonal matmul; output is already [q_s | d_s].
    sem = jnp.maximum(
        jnp.dot(pooled, w_ref[W_SEM_ROW:W_SEM_ROW + L2, :LAT2],
                preferred_element_type=jnp.float32)
        + w_ref[B_SEM_ROW:B_SEM_ROW + 1, :LAT2],
        0.0)                                                    # (B, 2*latent)

    # 4) learn_gamma on the already-concatenated features; one whole-block store.
    out_ref[...] = (jnp.dot(sem, w_ref[W_G_ROW:W_G_ROW + LAT2, :2],
                            preferred_element_type=jnp.float32)
                    + w_ref[B_G_ROW:B_G_ROW + 1, :2])           # (B, 2)


# ---------------------------------------------------------------------------
# One-time weight packing (hoisted OUT of the per-call forward path)
# ---------------------------------------------------------------------------
def pack_weights(params):
    C, H, K = KERNEL_OUT, HIDDEN_SIZE, KERNEL_SIZE
    L, LAT = MAX_LEN, LATENT_OUT

    def wcol(w):
        # PyTorch Conv1d weight (C, H, K) -> (C, K*H) matching im2col row r = t*H + h.
        return np.transpose(np.asarray(w, np.float32), (0, 2, 1)).reshape(C, K * H)

    wp = np.zeros((WPACK_ROWS, WPACK_COLS), np.float32)
    # Block-diagonal conv weights; bias fused as the last (ones-row) column.
    wp[0:C, 0:KH] = wcol(params["wqc"])
    wp[0:C, 2 * KH] = np.asarray(params["bqc"], np.float32)
    wp[C:C2, KH:2 * KH] = wcol(params["wdc"])
    wp[C:C2, 2 * KH] = np.asarray(params["bdc"], np.float32)
    # Block-diagonal sem weights + biases.
    wp[W_SEM_ROW:W_SEM_ROW + L, 0:LAT] = np.asarray(params["wqs"], np.float32).T
    wp[W_SEM_ROW + L:W_SEM_ROW + 2 * L, LAT:2 * LAT] = np.asarray(params["wds"], np.float32).T
    wp[B_SEM_ROW, 0:LAT] = np.asarray(params["bqs"], np.float32)
    wp[B_SEM_ROW, LAT:2 * LAT] = np.asarray(params["bds"], np.float32)
    # learn_gamma.
    wp[W_G_ROW:W_G_ROW + 2 * LAT, 0:2] = np.asarray(params["wg"], np.float32).T
    wp[B_G_ROW, 0:2] = np.asarray(params["bg"], np.float32)
    return jnp.asarray(wp)


# ---------------------------------------------------------------------------
# Per-call forward: embedding gather + im2col + ONE pallas_call
# ---------------------------------------------------------------------------
def dssm_two_forward(wpack, emb, q_ids, d_ids, *, kmax=KMAX):
    assert kmax == 1, "non-'bce' learn_gamma head requires kmax == 1"
    eq = emb[q_ids].astype(jnp.float32)          # (B, L, H)
    ed = emb[d_ids].astype(jnp.float32)
    B, L, H = eq.shape
    K = KERNEL_SIZE
    Lout = L - K + 1
    assert Lout == MAX_LEN, "conv output width must equal max_len"

    def im2col(e):
        # (B, L, H) -> (K*H, B*Lout); row r = t*H + h, col = b*Lout + p.
        # TODO(synk): if seq/batch scale, build the K shifted views inside the
        # kernel from one (B,L,H) buffer instead of triplicating bytes here.
        cols = jnp.stack([e[:, t:t + Lout, :] for t in range(K)], axis=1)  # (B,K,Lout,H)
        return jnp.transpose(cols, (1, 3, 0, 2)).reshape(K * H, B * Lout)

    x_all = jnp.concatenate(
        [im2col(eq), im2col(ed), jnp.ones((1, B * Lout), jnp.float32)],
        axis=0)                                                 # (2*K*H+1, B*Lout)

    vmem = pl.BlockSpec(memory_space=pltpu.MemorySpace.VMEM)
    # Gridless: total resident data < 100 KiB, far under VMEM on v5e/v6e/v7x.
    # (If batch scales, add a "parallel" grid axis over batch for v7x's 2 TCs.)
    return pl.pallas_call(
        dssm_kernel,
        out_shape=jax.ShapeDtypeStruct((B, 2), jnp.float32),
        in_specs=[vmem, vmem],
        out_specs=vmem,
    )(x_all, wpack)


# ---------------------------------------------------------------------------
# Pure-JAX reference (mirrors the PyTorch forward exactly, f32)
# ---------------------------------------------------------------------------
def forward_ref(params, q_ids, d_ids):
    emb = params["emb"]
    q = jnp.transpose(emb[q_ids], (0, 2, 1))
    d = jnp.transpose(emb[d_ids], (0, 2, 1))

    def conv1d(x, w, b):
        y = jax.lax.conv_general_dilated(
            x, w, window_strides=(1,), padding="VALID",
            dimension_numbers=("NCH", "OIH", "NCH"),
            precision=jax.lax.Precision.HIGHEST)
        return y + b[None, :, None]

    def kmax_pool(x, k):                     # x: (B, C, L), pool over axis 1
        xt = jnp.swapaxes(x, 1, 2)           # (B, L, C)
        _, idx = jax.lax.top_k(xt, k)
        idx = jnp.sort(idx, axis=-1)
        vals = jnp.take_along_axis(xt, idx, axis=-1)
        return jnp.swapaxes(vals, 1, 2)      # (B, k, L)

    def branch(x, wc, bc, ws, bs):
        c = jax.nn.relu(conv1d(x, wc, bc))
        p = kmax_pool(c, KMAX)
        s = jax.nn.relu(jnp.einsum("bkl,ol->bko", p, ws,
                                   precision=jax.lax.Precision.HIGHEST) + bs)
        return s.reshape(s.shape[0], -1)

    qs = branch(q, params["wqc"], params["bqc"], params["wqs"], params["bqs"])
    ds = branch(d, params["wdc"], params["bdc"], params["wds"], params["bds"])
    feat = jnp.concatenate([qs, ds], axis=1)
    return feat @ params["wg"].T + params["bg"][None, :]


# ---------------------------------------------------------------------------
def make_params(key):
    ks = jax.random.split(key, 11)
    s = 0.1
    return {
        "emb": jax.random.normal(ks[0], (VOCAB_SIZE, HIDDEN_SIZE), jnp.float32),
        "wqc": s * jax.random.normal(ks[1], (KERNEL_OUT, HIDDEN_SIZE, KERNEL_SIZE), jnp.float32),
        "bqc": s * jax.random.normal(ks[2], (KERNEL_OUT,), jnp.float32),
        "wdc": s * jax.random.normal(ks[3], (KERNEL_OUT, HIDDEN_SIZE, KERNEL_SIZE), jnp.float32),
        "bdc": s * jax.random.normal(ks[4], (KERNEL_OUT,), jnp.float32),
        "wqs": s * jax.random.normal(ks[5], (LATENT_OUT, MAX_LEN), jnp.float32),
        "bqs": s * jax.random.normal(ks[6], (LATENT_OUT,), jnp.float32),
        "wds": s * jax.random.normal(ks[7], (LATENT_OUT, MAX_LEN), jnp.float32),
        "bds": s * jax.random.normal(ks[8], (LATENT_OUT,), jnp.float32),
        "wg": s * jax.random.normal(ks[9], (2, LATENT_OUT * 2), jnp.float32),
        "bg": s * jax.random.normal(ks[10], (2,), jnp.float32),
    }


if __name__ == "__main__":
    key = jax.random.PRNGKey(0)
    pkey, qkey, dkey = jax.random.split(key, 3)
    params = make_params(pkey)
    q_ids = jax.random.randint(qkey, (BATCH, SEQ_LEN), 0, VOCAB_SIZE, jnp.int32)
    d_ids = jax.random.randint(dkey, (BATCH, SEQ_LEN), 0, VOCAB_SIZE, jnp.int32)

    # Static weight packing done ONCE, outside the jitted per-call path.
    wpack = pack_weights(params)
    fwd = jax.jit(dssm_two_forward)
    out = jax.block_until_ready(fwd(wpack, params["emb"], q_ids, d_ids))

    ref = forward_ref(params, q_ids, d_ids)
    assert out.shape == (BATCH, 2), out.shape
    # All operands are f32 now (no explicit bf16 casts); tolerance kept
    # conservative only for MXU default-precision f32 pass behavior.
    if not np.allclose(np.asarray(out), np.asarray(ref), rtol=2e-2, atol=2e-2):
        raise AssertionError(f"mismatch:\nkernel={out}\nref={ref}")

    print("KERNEL_OK")
</pallas_src>

<mosaic_0001>
module attributes {stable_mosaic.version = 11 : i64} {
  func.func @dssm_kernel(%arg0: memref<193x32xf32, #tpu.memory_space<vmem>>, %arg1: memref<96x193xf32, #tpu.memory_space<vmem>>, %arg2: memref<2x2xf32, #tpu.memory_space<vmem>>) attributes {dimension_semantics = [], scalar_prefetch = 0 : i64, scratch_operands = 0 : i64, tpu.core_type = #tpu.core_type<tc>} {
    %c0 = arith.constant 0 : index
    %c0_0 = arith.constant 0 : index
    %0 = vector.load %arg1[%c0, %c0_0] : memref<96x193xf32, #tpu.memory_space<vmem>>, vector<32x193xf32>
    %c0_1 = arith.constant 0 : index
    %c0_2 = arith.constant 0 : index
    %1 = vector.load %arg0[%c0_1, %c0_2] : memref<193x32xf32, #tpu.memory_space<vmem>>, vector<193x32xf32>
    %cst = arith.constant dense<0.000000e+00> : vector<32x32xf32>
    %2 = tpu.matmul %0, %1, %cst {dimension_numbers = #tpu.dot_dimension_numbers<[1], [0], [0], [1], [0, 0, 1, 1], [], []>} : vector<32x193xf32>, vector<193x32xf32>, vector<32x32xf32> -> vector<32x32xf32>
    %cst_3 = arith.constant 0.000000e+00 : f32
    %3 = vector.broadcast %cst_3 : f32 to vector<32x32xf32>
    %4 = arith.maximumf %2, %3 : vector<32x32xf32>
    %5 = vector.extract_strided_slice %4 {offsets = [0, 0], sizes = [16, 32], strides = [1, 1]} : vector<32x32xf32> to vector<16x32xf32>
    %cst_4 = arith.constant dense<0xFF800000> : vector<32xf32>
    %6 = vector.multi_reduction <maximumf>, %5, %cst_4 [0] : vector<16x32xf32> to vector<32xf32>
    %7 = vector.shape_cast %6 : vector<32xf32> to vector<1x32xf32>
    %8 = vector.extract_strided_slice %4 {offsets = [16, 0], sizes = [16, 32], strides = [1, 1]} : vector<32x32xf32> to vector<16x32xf32>
    %cst_5 = arith.constant dense<0xFF800000> : vector<32xf32>
    %9 = vector.multi_reduction <maximumf>, %8, %cst_5 [0] : vector<16x32xf32> to vector<32xf32>
    %10 = vector.shape_cast %9 : vector<32xf32> to vector<1x32xf32>
    %11 = vector.extract_strided_slice %7 {offsets = [0, 0], sizes = [1, 16], strides = [1, 1]} : vector<1x32xf32> to vector<1x16xf32>
    %12 = vector.extract_strided_slice %7 {offsets = [0, 16], sizes = [1, 16], strides = [1, 1]} : vector<1x32xf32> to vector<1x16xf32>
    %13 = tpu.concatenate %11, %12 in 0 : vector<1x16xf32>, vector<1x16xf32> -> vector<2x16xf32>
    %14 = vector.extract_strided_slice %10 {offsets = [0, 0], sizes = [1, 16], strides = [1, 1]} : vector<1x32xf32> to vector<1x16xf32>
    %15 = vector.extract_strided_slice %10 {offsets = [0, 16], sizes = [1, 16], strides = [1, 1]} : vector<1x32xf32> to vector<1x16xf32>
    %16 = tpu.concatenate %14, %15 in 0 : vector<1x16xf32>, vector<1x16xf32> -> vector<2x16xf32>
    %17 = tpu.concatenate %13, %16 in 1 : vector<2x16xf32>, vector<2x16xf32> -> vector<2x32xf32>
    %c32 = arith.constant 32 : index
    %c0_6 = arith.constant 0 : index
    %18 = vector.load %arg1[%c32, %c0_6] : memref<96x193xf32, #tpu.memory_space<vmem>>, vector<32x16xf32>
    %cst_7 = arith.constant dense<0.000000e+00> : vector<2x16xf32>
    %19 = tpu.matmul %17, %18, %cst_7 {dimension_numbers = #tpu.dot_dimension_numbers<[1], [0], [0], [1], [0, 0, 1, 1], [], []>} : vector<2x32xf32>, vector<32x16xf32>, vector<2x16xf32> -> vector<2x16xf32>
    %c64 = arith.constant 64 : index
    %c0_8 = arith.constant 0 : index
    %20 = vector.load %arg1[%c64, %c0_8] : memref<96x193xf32, #tpu.memory_space<vmem>>, vector<1x16xf32>
    %21 = vector.broadcast %20 : vector<1x16xf32> to vector<2x16xf32>
    %22 = arith.addf %19, %21 : vector<2x16xf32>
    %cst_9 = arith.constant 0.000000e+00 : f32
    %23 = vector.broadcast %cst_9 : f32 to vector<2x16xf32>
    %24 = arith.maximumf %22, %23 : vector<2x16xf32>
    %c72 = arith.constant 72 : index
    %c0_10 = arith.constant 0 : index
    %25 = vector.load %arg1[%c72, %c0_10] : memref<96x193xf32, #tpu.memory_space<vmem>>, vector<16x2xf32>
    %cst_11 = arith.constant dense<0.000000e+00> : vector<2x2xf32>
    %26 = tpu.matmul %24, %25, %cst_11 {dimension_numbers = #tpu.dot_dimension_numbers<[1], [0], [0], [1], [0, 0, 1, 1], [], []>} : vector<2x16xf32>, vector<16x2xf32>, vector<2x2xf32> -> vector<2x2xf32>
    %c88 = arith.constant 88 : index
    %c0_12 = arith.constant 0 : index
    %27 = vector.load %arg1[%c88, %c0_12] : memref<96x193xf32, #tpu.memory_space<vmem>>, vector<1x2xf32>
    %28 = vector.broadcast %27 : vector<1x2xf32> to vector<2x2xf32>
    %29 = arith.addf %26, %28 : vector<2x2xf32>
    %c0_13 = arith.constant 0 : index
    %c0_14 = arith.constant 0 : index
    %30 = vector.load %arg2[%c0_13, %c0_14] : memref<2x2xf32, #tpu.memory_space<vmem>>, vector<2x2xf32>
    tpu.vector_store %arg2[%c0_13, %c0_14], %29 {strides = array<i32>} : memref<2x2xf32, #tpu.memory_space<vmem>>, vector<2x2xf32>,
    return
  }
}

</mosaic_0001>

<bundles_post_ra>
// kernel: dssm_two_forward.1
= control target key start
LH: loop header
LB: loop body
LE: loop exit
PB: predicated region body
PF: predicated region fallthrough
CT: control target
= control target key end

     0   :  { %v417_v1 = vmov 0.0   ;;  %vm45_vm0 = vcmask 531456   ;;  %s610_s0 = inlined_call_operand.vmem [shape: f32[193,32], index: 0, kind: input, shape index: {}]   ;;  %s611_s1 = inlined_call_operand.vmem [shape: f32[96,193], index: 1, kind: input, shape index: {}]   ;;  %s612_s2 = inlined_call_operand.hbm [shape: f32[2,2], index: 2, kind: output, shape index: {}]  }
   0x1   :  { %v35_v0 = vld [vmem:[%s610_s0 + $0x78] sm:$0xff]  ;;  %62 = vmatprep.subr.mxu0 %v417_v1  ;;  %v34_v2 = vld [vmem:[%s610_s0 + $0x70] sm:$0xff]  ;;  %372 = vmatprep.subr.mxu1 %v417_v1  ;;  %v33_v3 = vld [vmem:[%s610_s0 + $0x68] sm:$0xff] }
   0x2   :  { %63 = vmatpush1.msra.mxu0 %v35_v0  ;;  %v32_v4 = vld [vmem:[%s610_s0 + $0x60] sm:$0xff]  ;;  %v31_v5 = vld [vmem:[%s610_s0 + $0x58] sm:$0xff]  ;;  %v13_v6 = vld [vmem:[%s611_s1 + $0x8] sm:$0xff] }
   0x3   :  { %64 = vmatprep.subr.mxu0 %v417_v1  ;;  %v30_v7 = vld [vmem:[%s610_s0 + $0x50] sm:$0xff]  ;;  %358 = vmatprep.mubr.msk.f32.mxu0 %vm45_vm0, %v13_v6  ;;  %v29_v8 = vld [vmem:[%s610_s0 + $0x48] sm:$0xff] }
   0x4   :  { %65 = vmatpush1.msra.mxu0 %v34_v2 }
   0x5   :  { %66 = vmatprep.subr.mxu0 %v417_v1 }
   0x6   :  { %67 = vmatpush1.msra.mxu0 %v33_v3 }
   0x7   :  { %68 = vmatprep.subr.mxu0 %v417_v1 }
   0x8   :  { %69 = vmatpush1.msra.mxu0 %v32_v4 }
   0x9   :  { %70 = vmatprep.subr.mxu0 %v417_v1 }
   0xa   :  { %71 = vmatpush1.msra.mxu0 %v31_v5 }
   0xb   :  { %72 = vmatprep.subr.mxu0 %v417_v1 }
   0xc   :  { %7 = vsyncpa [#allocation3], 0  ;;  %73 = vmatpush1.msra.mxu0 %v30_v7  ;;  %v28_v9 = vld [vmem:[%s610_s0 + $0x40] sm:$0xff]  ;;  %v27_v10 = vld [vmem:[%s610_s0 + $0x38] sm:$0xff]  ;;  %vm58_vm1 = vcmask 1040384   ;;  %vm151_vm2 = vcmask 261120  }
   0xd   :  { %74 = vmatprep.subr.mxu0 %v417_v1  ;;  %v26_v11 = vld [vmem:[%s610_s0 + $0x30] sm:$0xff]  ;;  %v25_v12 = vld [vmem:[%s610_s0 + $0x28] sm:$0xff]  ;;  %v24_v13 = vld [vmem:[%s610_s0 + $0x20] sm:$0xff]  ;;  %s418_s24 = smov 112   ;;  %vm419_vm3 = vmmov 0   ;;  %s420_s27 = smov 16  }
   0xe   :  { %75 = vmatpush1.msra.mxu0 %v29_v8  ;;  %v23_v14 = vld [vmem:[%s610_s0 + $0x18] sm:$0xff]  ;;  %v22_v15 = vld [vmem:[%s610_s0 + $0x10] sm:$0xff]  ;;  %v21_v16 = vld [vmem:[%s610_s0 + $0x8] sm:$0xff]  ;;  %380 = vmatprep.mubr.msk.f32.mxu1 %vm419_vm3, %v417_v1  ;;  %vm184_vm4 = vcmask 130048   ;;  %s421_s8 = smov [#allocation2]   ;;  %vm341_vm5 = vcmask 9216  }
   0xf   :  { %76 = vmatprep.subr.mxu0 %v417_v1  ;;  %v20_v17 = vld [vmem:[%s610_s0] sm:$0xff]  ;;  %v43_v19 = vld [vmem:[%s610_s0 + $0xb8] sm:$0xff]  ;;  %v42_v20 = vld [vmem:[%s610_s0 + $0xb0] sm:$0xff]  ;;  %s349_s9 = sshll.u32 %s421_s8, 4  ;;  %s350_s9 = int_to_ptr.vmem [resolvable:$true] %s349_s9 }
  0x10   :  { %77 = vmatpush1.msra.mxu0 %v28_v9  ;;  %v44_v18 = vld [vmem:[%s610_s0 + $0xc0] sm:$0x1]  ;;  %v41_v21 = vld [vmem:[%s610_s0 + $0xa8] sm:$0xff]  ;;  %v39_v23 = vld [vmem:[%s610_s0 + $0x98] sm:$0xff]  ;;  %s395_s10 = scalar_lea.vmem %s350_s9, 32  ;;  %p400_p1 = scmp.lt.s32.totalorder %s350_s9, %s350_s9 }
  0x11   :  { %78 = vmatprep.subr.mxu0 %v417_v1  ;;  %v40_v22 = vld [vmem:[%s610_s0 + $0xa0] sm:$0xff]  ;;  %v38_v24 = vld [vmem:[%s610_s0 + $0x90] sm:$0xff]  ;;  %v37_v25 = vld [vmem:[%s610_s0 + $0x88] sm:$0xff]  ;;  %p396_p0 = scmp.ne.s32.totalorder %s350_s9, %s395_s10  ;;  %p401_p2 = scmp.lt.s32.totalorder %s395_s10, %s395_s10 }
  0x12   :  { %79 = vmatpush1.msra.mxu0 %v27_v10  ;;  %v36_v26 = vld [vmem:[%s610_s0 + $0x80] sm:$0xff]  ;;  %v15_v28 = vld [vmem:[%s611_s1 + $0x18] sm:$0xff]  ;;  %v14_v29 = vld [vmem:[%s611_s1 + $0x10] sm:$0xff] }
  0x13   :  { %80 = vmatprep.subr.mxu0 %v417_v1  ;;  %v12_v27 = vld [vmem:[%s611_s1] sm:$0xff]  ;;  %v17_v30 = vld [vmem:[%s611_s1 + $0x28] sm:$0xff]  ;;  %v19_v32 = vld [vmem:[%s611_s1 + $0x38] sm:$0xff]  ;;  %p402_p3 = por %p401_p2, %p400_p1 }
  0x14   :  { %81 = vmatpush1.msra.mxu0 %v26_v11  ;;  %v16_v31 = vld [vmem:[%s611_s1 + $0x20] sm:$0xff]  ;;  %v18_v33 = vld [vmem:[%s611_s1 + $0x30] sm:$0xff] }
  0x15   :  { %82 = vmatprep.subr.mxu0 %v417_v1  ;;  %v189_v57 = vld [vmem:[%s611_s1 + $0x70] sm:$0xff]  ;;  %v188_v58 = vld [vmem:[%s611_s1 + $0x60] sm:$0xff]  ;;  %p403_p4 = pnand %p402_p3, %p396_p0 }
  0x16   :  { %83 = vmatpush1.msra.mxu0 %v25_v12  ;;  %373 = vmatpush3.msra.mxu1 %v189_v57  ;;  %v187_v60 = vld [vmem:[%s611_s1 + $0x50] sm:$0xff]  ;;  %v186_v4 = vld [vmem:[%s611_s1 + $0x40] sm:$0xff] }
  0x17   :  { %84 = vmatprep.subr.mxu0 %v417_v1  ;;  %374 = vmatprep.subr.mxu1 %v417_v1  ;;  %v266_v11 = vld [vmem:[%s611_s1 + $0xa0] sm:$0xff]  ;;  %v265_v12 = vld [vmem:[%s611_s1 + $0x90] sm:$0xff] }
  0x18   :  { %85 = vmatpush1.msra.mxu0 %v24_v13  ;;  %375 = vmatpush3.msra.mxu1 %v188_v58  ;;  %v190_v13 = vld [vmem:[%s611_s1 + $0x80] ss:$0 sm:$0xff] }
  0x19   :  { %86 = vmatprep.subr.mxu0 %v417_v1  ;;  %376 = vmatprep.subr.mxu1 %v417_v1 }
  0x1a   :  { %87 = vmatpush1.msra.mxu0 %v23_v14  ;;  %377 = vmatpush3.msra.mxu1 %v187_v60 }
  0x1b   :  { %88 = vmatprep.subr.mxu0 %v417_v1  ;;  %378 = vmatprep.subr.mxu1 %v417_v1 }
  0x1c   :  { %89 = vmatpush1.msra.mxu0 %v22_v15  ;;  %379 = vmatpush3.msra.mxu1 %v186_v4 }
  0x1d   :  { %90 = vmatprep.subr.mxu0 %v417_v1  ;;  %383 = vmatprep.subr.mxu1 %v417_v1 }
  0x1e   :  { %91 = vmatpush1.msra.mxu0 %v21_v16 }
  0x1f   :  { %92 = vmatprep.subr.mxu0 %v417_v1 }
  0x20   :  { %93 = vmatpush1.msra.mxu0 %v20_v17 }
  0x21   :  { %108 = vmatprep.subr.mxu0 %v417_v1 }
  0x22   :  { %357 = vmatpush2.msk.msra.mxu0 %vm58_vm1, %v44_v18  ;;  %v267_v18 = vld [vmem:[%s611_s1 + $0xb0] ss:$0 sm:$0xff] }
  0x23   :  { %110 = vmatprep.subr.mxu0 %v417_v1 }
  0x24   :  { %111 = vmatpush2.msra.mxu0 %v43_v19 }
  0x25   :  { %112 = vmatprep.subr.mxu0 %v417_v1 }
  0x26   :  { %113 = vmatpush2.msra.mxu0 %v42_v20 }
  0x27   :  { %114 = vmatprep.subr.mxu0 %v417_v1 }
  0x28   :  { %115 = vmatpush2.msra.mxu0 %v41_v21 }
  0x29   :  { %116 = vmatprep.subr.mxu0 %v417_v1 }
  0x2a   :  { %117 = vmatpush2.msra.mxu0 %v40_v22 }
  0x2b   :  { %118 = vmatprep.subr.mxu0 %v417_v1 }
  0x2c   :  { %119 = vmatpush2.msra.mxu0 %v39_v23 }
  0x2d   :  { %120 = vmatprep.subr.mxu0 %v417_v1 }
  0x2e   :  { %121 = vmatpush2.msra.mxu0 %v38_v24 }
  0x2f   :  { %122 = vmatprep.subr.mxu0 %v417_v1 }
  0x30   :  { %123 = vmatpush2.msra.mxu0 %v37_v25 }
  0x31   :  { %124 = vmatprep.subr.mxu0 %v417_v1 }
  0x32   :  { %125 = vmatpush2.msra.mxu0 %v36_v26 }
  0x33   :  { %127 = vmatmul.mubr.f32.vlgmr.msra.gmra.mxu0 %v12_v27 }
  0x34   :  { %359 = vmatprep.mubr.msk.f32.mxu0 %vm45_vm0, %v15_v28 }
  0x37   :  { %132 = vmatmul.mubr.f32.gmra.mxu0 %v14_v29 }
  0x38   :  { %360 = vmatprep.mubr.msk.f32.mxu0 %vm45_vm0, %v17_v30 }
  0x3b   :  { %137 = vmatmul.mubr.f32.gmra.mxu0 %v16_v31 }
  0x3c   :  { %361 = vmatprep.mubr.msk.f32.mxu0 %vm45_vm0, %v19_v32 }
  0x3f   :  { %142 = vmatmul.mubr.f32.gmra.mxu0 %v18_v33 }
  0xf3   :  { %v128_v34 = vpop.f32.mrf.mxu0 }
  0xf4   :  { %v147_v36 = vmax.f32 %v128_v34, 0.0 }
  0xf5   :  { %v130_v35 = vpop.f32.mrf.mxu0 }
  0xf6   :  { %v152_v40 = vsel %vm151_vm2, %v147_v36, -inf }
  0xf7   :  { %v133_v37 = vpop.f32.mrf.mxu0 }
  0xf8   :  { %v148_v38 = vmax.f32 %v133_v37, 0.0 }
  0xf9   :  { %v135_v39 = vpop.f32.mrf.mxu0 }
  0xfa   :  { %v153_v41 = vsel %vm151_vm2, %v148_v38, -inf }
  0xfb   :  { %v154_v42 = vmax.f32 %v152_v40, %v153_v41  ;;  %v138_v43 = vpop.f32.mrf.mxu0 }
  0xfc   :  { %v149_v45 = vmax.f32 %v138_v43, 0.0 }
  0xfd   :  { %v140_v44 = vpop.f32.mrf.mxu0  ;;  %v155_v46 = vrot.slane %v154_v42, 4 }
  0xfe   :  { %v161_v50 = vsel %vm151_vm2, %v149_v45, -inf }
  0xff   :  { %v143_v47 = vpop.f32.mrf.mxu0  ;;  %v156_v52 = vmax.f32 %v154_v42, %v155_v46 }
 0x100   :  { %v150_v48 = vmax.f32 %v143_v47, 0.0 }
 0x101   :  { %v145_v49 = vpop.f32.mrf.mxu0  ;;  %v157_v55 = vrot.slane %v156_v52, 2 }
 0x102   :  { %v162_v51 = vsel %vm151_vm2, %v150_v48, -inf }
 0x103   :  { %v163_v53 = vmax.f32 %v161_v50, %v162_v51  ;;  %v158_v62 = vmax.f32 %v156_v52, %v157_v55 }
 0x105   :  { %v164_v54 = vrot.slane %v163_v53, 4  ;;  %v159_v2 = vrot.slane %v158_v62, 1 }
 0x107   :  { %v165_v56 = vmax.f32 %v163_v53, %v164_v54  ;;  %v160_v3 = vmax.f32 %v158_v62, %v159_v2 }
 0x109   :  { %v166_v59 = vrot.slane %v165_v56, 2 }
 0x10b   :  { %v167_v61 = vmax.f32 %v165_v56, %v166_v59 }
 0x10d   :  { %v168_v63 = vrot.slane %v167_v61, 1 }
 0x10f   :  { %v169_v0 = vmax.f32 %v167_v61, %v168_v63 }
 0x111   :  { %176 = vrot.lane.b32.xlu0 %v169_v0, %s418_s24 }
 0x115   :  { %171 = vrot.lane.b32.xlu0 %v160_v3, %s418_s24 }
 0x183   :  { %v177_v5 = vpop.permute.xlu0 %176 }
 0x184   :  { %v179_v6 = vsel %vm58_vm1, %v169_v0, %v177_v5 }
 0x185   :  { %181 = vrot.lane.b32.xlu1 %v179_v6, %s420_s27 }
 0x187   :  { %v172_v7 = vpop.permute.xlu0 %171 }
 0x188   :  { %v174_v8 = vsel %vm58_vm1, %v160_v3, %v172_v7 }
 0x1f7   :  { %v182_v9 = vpop.permute.xlu1 %181 }
 0x1f8   :  { %v185_v10 = vsel %vm184_vm4, %v174_v8, %v182_v9 }
 0x1f9   :  { %381 = vmatmul.mubr.msk.f32.vlgmr.msra.gmra.mxu1 %vm151_vm2, %v185_v10 }
 0x1fa   :  { %387 = vmatprep.mubr.msk.f32.mxu1 %vm419_vm3, %v417_v1  ;;  %384 = vmatpush3.msra.mxu1 %v266_v11 }
 0x1fb   :  { %385 = vmatprep.subr.mxu1 %v417_v1 }
 0x1fc   :  { %386 = vmatpush3.msra.mxu1 %v265_v12 }
 0x2b9   :  { %v260_v14 = vpop.f32.mrf.mxu1 }
 0x2ba   :  { %v261_v15 = vadd.f32 %v260_v14, %v190_v13 }
 0x2bb   :  { %v382_v16 = vpop.f32.mrf.mxu1 }
 0x2bc   :  { %v264_v17 = vmax.f32 %v261_v15, 0.0 }
 0x2be   :  { %388 = vmatmul.mubr.msk.f32.vlgmr.msra.gmra.mxu1 %vm184_vm4, %v264_v17 }
 0x37e   :  { %v337_v1 = vpop.f32.mrf.mxu1 }
 0x37f   :  { %v338_v19 = vadd.f32 %v337_v1, %v267_v18 }
 0x380   :  { %v389_v20 = vpop.f32.mrf.mxu1 }
 0x381   :  { %342 = vst.msk [vmem:[#allocation2] sm:$0x3] %vm341_vm5, %v338_v19 }
 0x382   :  { %406 = shalt.err (!%p403_p4)
}
 0x383   :  { %352 = dma.vmem_to_hbm [thread:$0]  %s350_s9, 32, %s612_s2, [#allocation3]  }
 0x384   :  { %415 = dma.done.wait [#allocation3], 32  }
 0x385   :  { %416 = vsyncadd [#allocation3], 4294967264 }
 0x386   :  { %356 = vsyncpa [#allocation3], 1 }

</bundles_post_ra>
